<compile_context>
chip_gen: v5e
topology: v5e:2x2
jax: 0.10.0
libtpu: 0.0.40
codegen_flags: <defaults>
</compile_context>

<pallas_src>
import functools

import jax
import jax.numpy as jnp
from jax.experimental import pallas as pl
from jax.experimental.pallas import tpu as pltpu

_LANE = 128
_MAX_LANES = 2048          # widest lane-dense last dim we use
_MiB = 1024 * 1024


def _round_up(x, m):
    return -(-x // m) * m


def _sublane_for(dtype):
    # f32 -> 8, bf16 -> 16, int8/fp8 -> 32 (sub-32-bit packs along sublanes).
    return max(8, 32 // jnp.dtype(dtype).itemsize)


def _tile_bytes_for_device():
    """Generation-tuned per-buffer tile size."""
    try:
        kind = jax.devices()[0].device_kind.lower()
    except Exception:
        kind = ""
    if "v7" in kind:
        return 6 * _MiB    # 2 in + 2 out buffers = 24 MiB < 32 MiB scoped default
    if "v6" in kind:
        return 4 * _MiB    # 16 MiB live < 32 MiB scoped default
    return 2 * _MiB        # v5e (16 MiB scoped default) and anything unknown


def _plan_tiles(total, dtype, tile_bytes):
    """Pick (lane_width tn, rows, row_tile tm) for the flattened tensor.

    Caller guarantees total % 128 == 0.
    """
    itemsize = jnp.dtype(dtype).itemsize
    sublane = _sublane_for(dtype)

    # Lane width: widest power-of-two multiple of 128 that (a) divides total,
    # so the flatten/reshape is a copy-free bitcast, and (b) still leaves at
    # least 2*sublane rows so we can form >= 2 row tiles.
    tn = _LANE
    while (tn < _MAX_LANES
           and total % (2 * tn) == 0
           and total // (2 * tn) >= 2 * sublane):
        tn *= 2
    rows = total // tn

    # Row tile sized so one buffer is ~tile_bytes, sublane-aligned.
    tm = max(sublane, (tile_bytes // (tn * itemsize)) // sublane * sublane)
    tm = min(tm, rows)

    # Guarantee >= 2 grid blocks when the slab is big enough: keeps both v7x
    # TensorCores busy and lets the pipeline overlap DMA with compute.
    if rows >= 2 * sublane and tm >= rows:
        tm = min(_round_up(-(-rows // 2), sublane), rows)
    return tn, rows, tm


def _lambda_kernel(l_ref, x_ref, o_ref):
    # l_ref: (1, 1) raw lambda (f32) in SMEM; |.| is folded into the kernel.
    # Cast the scalar to the tile dtype so bf16/int8 tiles stay packed.
    scale = jnp.abs(l_ref[0, 0]).astype(x_ref.dtype)
    o_ref[...] = x_ref[...] * scale


def _lambda_forward_impl(x, lam, donate_x):
    orig_shape = x.shape
    total = x.size
    dtype = x.dtype
    tile_bytes = _tile_bytes_for_device()

    # Flatten: a free bitcast whenever total % 128 == 0 (typical activations).
    flat = x.reshape(-1)
    pad = 0
    if total % _LANE != 0:
        # TODO(synk): last-resort pad path (adds one extra full read+write for
        # the pad and one for the final slice); only hit when numel % 128 != 0.
        pad = _round_up(total, _LANE) - total
        flat = jnp.pad(flat, (0, pad))

    tn, rows, tm = _plan_tiles(total + pad, dtype, tile_bytes)
    x2d = flat.reshape(rows, tn)

    # Raw lambda as a (1, 1) f32 SMEM scalar (abs applied inside the kernel).
    l_arr = jnp.asarray(lam, dtype=jnp.float32).reshape(1, 1)

    grid_m = pl.cdiv(rows, tm)

    out2d = pl.pallas_call(
        _lambda_kernel,
        out_shape=jax.ShapeDtypeStruct((rows, tn), dtype),
        grid_spec=pltpu.PrefetchScalarGridSpec(
            num_scalar_prefetch=0,
            grid=(grid_m,),
            in_specs=[
                pl.BlockSpec(memory_space=pltpu.MemorySpace.SMEM),  # lambda
                pl.BlockSpec((tm, tn), lambda i: (i, 0)),           # x tile
            ],
            out_specs=pl.BlockSpec((tm, tn), lambda i: (i, 0)),
        ),
        # Only alias x into the output when the caller actually donates x;
        # otherwise XLA would insert a defensive full-tensor copy.
        input_output_aliases=({1: 0} if donate_x else {}),
        compiler_params=pltpu.CompilerParams(
            dimension_semantics=("parallel",),
        ),
        # NOTE: pipeline_mode=pl.Buffered(3) on the x spec is a possible few-%
        # win on v7x but needs measurement; default double-buffering kept.
    )(l_arr, x2d)

    out_flat = out2d.reshape(-1)
    if pad:
        out_flat = out_flat[:total]
    return out_flat.reshape(orig_shape)


_lambda_forward_jit = jax.jit(_lambda_forward_impl,
                              static_argnames=("donate_x",))


def lambda_layer_forward(x, lam, n_samples=None, donate_x=False):
    """y = x * |lam|  (LambdaLayer.forward; n_samples is unused upstream)."""
    del n_samples  # unused by the reference forward
    return _lambda_forward_jit(x, lam, donate_x=donate_x)


if __name__ == "__main__":
    key = jax.random.PRNGKey(0)
    kx, kb = jax.random.split(key)

    # Small NCHW activation tensor.
    N, C, H, W = 2, 4, 16, 16
    x = jax.random.normal(kx, (N, C, H, W), dtype=jnp.float32)

    # Negative value so torch.abs semantics are actually exercised.
    lam = jnp.array([-1.5], dtype=jnp.float32)
    n_samples = 8  # unused, mirrors the PyTorch forward signature

    y = jax.block_until_ready(lambda_layer_forward(x, lam, n_samples))
    y_ref = x * jnp.abs(lam.reshape(1, 1, 1))
    assert y.shape == x.shape
    assert jnp.allclose(y, y_ref, atol=1e-6, rtol=1e-6)

    # Ragged numel (2*3*7*7 = 294, not a multiple of 128): last-resort pad path.
    x2 = jax.random.normal(kb, (2, 3, 7, 7), dtype=jnp.float32)
    y2 = jax.block_until_ready(lambda_layer_forward(x2, lam, n_samples))
    assert jnp.allclose(y2, x2 * jnp.abs(lam.reshape(1, 1, 1)),
                        atol=1e-6, rtol=1e-6)

    # bf16 path: dtype-aware sublane alignment + packed scalar multiply.
    x3 = jax.random.normal(kx, (N, C, H, W), dtype=jnp.bfloat16)
    y3 = jax.block_until_ready(lambda_layer_forward(x3, lam, n_samples))
    y3_ref = x3 * jnp.abs(lam[0]).astype(jnp.bfloat16)
    assert jnp.allclose(y3.astype(jnp.float32), y3_ref.astype(jnp.float32),
                        atol=1e-2, rtol=1e-2)

    print("KERNEL_OK")
</pallas_src>

<mosaic_0001>
module attributes {stable_mosaic.version = 11 : i64} {
  func.func @_lambda_kernel(%arg0: i32, %arg1: memref<1x1xf32, #tpu.memory_space<smem>>, %arg2: memref<8x128xf32, #tpu.memory_space<vmem>>, %arg3: memref<8x128xf32, #tpu.memory_space<vmem>>) attributes {dimension_semantics = [#tpu.dimension_semantics<parallel>], iteration_bounds = array<i64: 2>, scalar_prefetch = 0 : i64, scratch_operands = 0 : i64, tpu.core_type = #tpu.core_type<tc>, window_params = [{transform_indices = @transform_0, window_bounds = array<i64: 1, 1>}, {transform_indices = @transform_1, window_bounds = array<i64: 8, 128>}, {transform_indices = @transform_2, window_bounds = array<i64: 8, 128>}]} {
    %c0 = arith.constant 0 : index
    %c0_0 = arith.constant 0 : index
    %0 = memref.load %arg1[%c0, %c0_0] : memref<1x1xf32, #tpu.memory_space<smem>>
    %1 = math.absf %0 : f32
    %c0_1 = arith.constant 0 : index
    %c0_2 = arith.constant 0 : index
    %2 = vector.load %arg2[%c0_1, %c0_2] : memref<8x128xf32, #tpu.memory_space<vmem>>, vector<8x128xf32>
    %3 = vector.broadcast %1 : f32 to vector<8x128xf32>
    %4 = arith.mulf %2, %3 : vector<8x128xf32>
    %c0_3 = arith.constant 0 : index
    %c0_4 = arith.constant 0 : index
    %5 = vector.load %arg3[%c0_3, %c0_4] : memref<8x128xf32, #tpu.memory_space<vmem>>, vector<8x128xf32>
    tpu.vector_store %arg3[%c0_3, %c0_4], %4 {strides = array<i32>} : memref<8x128xf32, #tpu.memory_space<vmem>>, vector<8x128xf32>,
    return
  }
  func.func @transform_0(%arg0: i32) -> (i32, i32) {
    %c0_i32 = arith.constant 0 : i32
    %c0_i32_0 = arith.constant 0 : i32
    %c0_i32_1 = arith.constant 0 : i32
    return %c0_i32, %c0_i32_0 : i32, i32
  }
  func.func @transform_1(%arg0: i32) -> (i32, i32) {
    %c0_i32 = arith.constant 0 : i32
    %c0_i32_0 = arith.constant 0 : i32
    return %arg0, %c0_i32 : i32, i32
  }
  func.func @transform_2(%arg0: i32) -> (i32, i32) {
    %c0_i32 = arith.constant 0 : i32
    %c0_i32_0 = arith.constant 0 : i32
    return %arg0, %c0_i32 : i32, i32
  }
}

</mosaic_0001>

<bundles_post_ra>
// kernel: _lambda_forward_impl.1
= control target key start
LH: loop header
LB: loop body
LE: loop exit
PB: predicated region body
PF: predicated region fallthrough
CT: control target
= control target key end

     0   :  { %s220_s11 = smov 0   ;;  %s248_s0 = inlined_call_operand.<no memory space> [shape: f32[1,1], index: 0, kind: input, shape index: {}]   ;;  %s249_s1 = inlined_call_operand.vmem [shape: f32[16,128], index: 1, kind: input, shape index: {}]   ;;  %s250_s2 = inlined_call_operand.vmem [shape: f32[16,128], index: 2, kind: output, shape index: {}]  }
   0x1   :  { %7 = sst [smem:[#allocation2]] %s248_s0 }
   0x2 LB: > { %s199_s12 = sadd.s32 4294967295, %s222_s11   ;;  %p203_p0 = scmp.ge.s32.totalorder %s222_s11, 1  ;;  %s222_s11 = sphi %s220_s11, %s13_s11  }
   0x3   : > { %p112_p1 = scmp.lt.s32.totalorder %s222_s11, 3 }
   0x5   : > { %p113_p2 = pnand %p203_p0, %p112_p1 }
   0x6   : > { %p132_p3 = scmp.lt.s32.totalorder (!%p113_p2), %s199_s12, 1  ;;  %s140_s13 = sld [smem:[#allocation2]] (!%p113_p2) }
   0x7   : > { %116 = sbr.rel (%p113_p2) target bundleno = 19 (0x13), region = 28 }
   0xc   : > { %s252_s12 = smov (!%p132_p3, %s199_s12), 1  ;;  %s141_s18 = sand.u32 2147483647, %s140_s13 }
   0xd   : > { %s204_s14 = sshll.u32 %s252_s12, 3  ;;  %v143_v1 = vstv %s141_s18 }
   0xe   : > { %s135_s17 = scalar_lea.vmem %s249_s1, %s204_s14  ;;  %s139_s20 = scalar_lea.vmem %s250_s2, %s204_s14 }
   0xf   : > { %v142_v0 = vld [vmem:[%s135_s17] sm:$0xff] }
  0x10   : > { %v144_v2 = vmul.f32 %v143_v1, %v142_v0 }
  0x12   : > { %145 = vst [vmem:[%s139_s20] sm:$0xff] %v144_v2 }
  0x13 PF: > { %s13_s11 = sadd.s32 1, %s222_s11  }
  0x14   : > { %p10_p4 = scmp.ge.s32.totalorder %s13_s11, 4  }
  0x16   :  { %12 = sbr.rel (!%p10_p4) target bundleno = 2 (0x2), region = 58 }

</bundles_post_ra>
